<compile_context>
chip_gen: v7x
topology: tpu7x:2x2x1
jax: 0.10.0
libtpu: 0.0.40
codegen_flags: <defaults>
</compile_context>

<pallas_src>
import functools

import jax
import jax.numpy as jnp
from jax.experimental import pallas as pl
from jax.experimental.pallas import tpu as pltpu

_LANES = 128


def _balanced_loss_kernel(x_ref, t_ref, out_ref,
                          pos_cnt_acc, neg_cnt_acc, pos_loss_acc, neg_loss_acc,
                          *, neg_weight, tile_rows, valid_rows, mask_tail):
    i = pl.program_id(0)

    @pl.when(i == 0)
    def _init():
        pos_cnt_acc[...] = jnp.zeros_like(pos_cnt_acc)
        neg_cnt_acc[...] = jnp.zeros_like(neg_cnt_acc)
        pos_loss_acc[...] = jnp.zeros_like(pos_loss_acc)
        neg_loss_acc[...] = jnp.zeros_like(neg_loss_acc)

    x = x_ref[...].astype(jnp.float32)            # (tile_rows, 128)
    t = t_ref[...].astype(jnp.float32)            # narrow dtypes upcast in-register

    pos = t == 1.0
    neg = t == 0.0

    if mask_tail:
        # Last grid block may extend past the real row count: mask stale rows.
        row = jax.lax.broadcasted_iota(jnp.int32, (tile_rows, _LANES), 0)
        valid = (row + i * tile_rows) < valid_rows
        pos = jnp.logical_and(pos, valid)
        neg = jnp.logical_and(neg, valid)

    # Stable BCE-with-logits: loss = max(x,0) - x*t + log1p(exp(-|x|))
    #   t==1 -> common - x ;  t==0 -> common ;  other t -> weight 0 anyway.
    common = jnp.maximum(x, 0.0) + jnp.log1p(jnp.exp(-jnp.abs(x)))

    posf = pos.astype(jnp.float32)
    negf = neg.astype(jnp.float32)

    def fold(v):
        # (tile_rows,128) -> (8,128): sublane-aligned vreg adds (VPU only),
        # defers the cross-lane XLU reduce to the finalize step.
        return v.reshape(tile_rows // 8, 8, _LANES).sum(axis=0)

    pos_cnt_acc[...] += fold(posf)
    neg_cnt_acc[...] += fold(negf)
    pos_loss_acc[...] += fold(jnp.where(pos, common - x, 0.0))
    neg_loss_acc[...] += fold(jnp.where(neg, common, 0.0))

    @pl.when(i == pl.num_programs(0) - 1)
    def _finalize():
        pos_cnt = jnp.sum(pos_cnt_acc[...])
        neg_cnt = jnp.sum(neg_cnt_acc[...])
        pos_loss = jnp.sum(pos_loss_acc[...])
        neg_loss = jnp.sum(neg_loss_acc[...])

        pos_present = (pos_cnt > 0).astype(jnp.float32)
        neg_present = (neg_cnt > 0).astype(jnp.float32)
        # Analytic sum of the (pre-normalization) weights.
        w_sum = pos_present + neg_weight * neg_present

        pos_term = jnp.where(pos_cnt > 0, pos_loss / pos_cnt, 0.0)
        neg_term = jnp.where(neg_cnt > 0, neg_weight * neg_loss / neg_cnt, 0.0)

        # Exact division, executed once (off the critical path).
        out_ref[0, 0] = (pos_term + neg_term) / w_sum


def balanced_loss(logits, target, neg_weight=1.0, *, max_tile_rows=1024):
    """Pallas implementation of BalancedLoss.forward (reduction='sum').

    `target` may be float (as in the PyTorch spec) or a narrow bool/int dtype
    (less HBM traffic on this memory-bound kernel).
    """
    x = logits.reshape(-1)
    if x.dtype != jnp.float32:
        x = x.astype(jnp.float32)
    t = target.reshape(-1)
    if t.dtype == jnp.bool_:
        t = t.astype(jnp.int8)   # bool can't hold the -1 padding sentinel

    n = x.shape[0]
    chunk = 8 * _LANES
    if n % chunk != 0:
        # Only pad when the flat size isn't already (8,128)-tileable.
        pad = chunk - (n % chunk)
        x = jnp.pad(x, (0, pad))
        t = jnp.pad(t, (0, pad), constant_values=-1)   # neither pos nor neg

    rows = x.shape[0] // _LANES
    x = x.reshape(rows, _LANES)
    t = t.reshape(rows, _LANES)

    tile_rows = min(int(max_tile_rows), rows)          # rows % 8 == 0 -> tile_rows % 8 == 0
    grid = pl.cdiv(rows, tile_rows)
    mask_tail = (rows % tile_rows) != 0

    kernel = functools.partial(
        _balanced_loss_kernel,
        neg_weight=float(neg_weight),
        tile_rows=tile_rows,
        valid_rows=rows,
        mask_tail=mask_tail,
    )

    out = pl.pallas_call(
        kernel,
        out_shape=jax.ShapeDtypeStruct((1, 1), jnp.float32),
        grid_spec=pltpu.PrefetchScalarGridSpec(
            num_scalar_prefetch=0,
            grid=(grid,),
            in_specs=[
                pl.BlockSpec((tile_rows, _LANES), lambda i: (i, 0)),
                pl.BlockSpec((tile_rows, _LANES), lambda i: (i, 0)),
            ],
            out_specs=pl.BlockSpec(
                (1, 1), lambda i: (0, 0),
                memory_space=pltpu.MemorySpace.SMEM),
            scratch_shapes=[pltpu.VMEM((8, _LANES), jnp.float32)] * 4,
        ),
        compiler_params=pltpu.CompilerParams(
            dimension_semantics=("arbitrary",)),
    )(x, t)
    # TODO(synk): on v7x, additionally shard the row axis across the 2 TensorCores
    # (core_parallel / pl.core_map) with per-core partials combined in an epilogue.
    return out[0, 0]


def _balanced_loss_ref(logits, target, neg_weight=1.0):
    """Pure-JAX reference mirroring the PyTorch module."""
    x = logits.astype(jnp.float32)
    t = target.astype(jnp.float32)
    pos = t == 1.0
    neg = t == 0.0
    pos_num = jnp.sum(pos.astype(jnp.float32))
    neg_num = jnp.sum(neg.astype(jnp.float32))
    w = jnp.where(pos, 1.0 / pos_num, jnp.where(neg, neg_weight / neg_num, 0.0))
    w = w / jnp.sum(w)
    loss = jnp.maximum(x, 0.0) - x * t + jnp.log1p(jnp.exp(-jnp.abs(x)))
    return jnp.sum(w * loss)


if __name__ == "__main__":
    key = jax.random.PRNGKey(0)
    k1, k2, k3, k4 = jax.random.split(key, 4)

    # BalancedLoss takes a logit map and a binary {0,1} target map of equal shape.
    shape = (2, 4, 16, 16)                       # 2048 elems -> 16 rows, single tile
    logits = jax.random.normal(k1, shape, dtype=jnp.float32)
    target = jax.random.bernoulli(k2, p=0.3, shape=shape).astype(jnp.float32)

    out = jax.block_until_ready(balanced_loss(logits, target, 1.0))
    ref = _balanced_loss_ref(logits, target, 1.0)
    assert jnp.allclose(out, ref, rtol=1e-5, atol=1e-5), (out, ref)

    # Multi-step grid (2 tiles) + non-unit neg_weight.
    out2 = jax.block_until_ready(balanced_loss(logits, target, 0.5, max_tile_rows=8))
    ref2 = _balanced_loss_ref(logits, target, 0.5)
    assert jnp.allclose(out2, ref2, rtol=1e-5, atol=1e-5), (out2, ref2)

    # Size not a multiple of 8*128 (exercises pad sentinel) and a partial last
    # grid block (exercises in-kernel row-tail masking).
    shape3 = (2, 4, 16, 20)                      # 2560 elems -> pad to 24 rows
    logits3 = jax.random.normal(k3, shape3, dtype=jnp.float32)
    target3 = jax.random.bernoulli(k4, p=0.4, shape=shape3).astype(jnp.float32)
    out3 = jax.block_until_ready(balanced_loss(logits3, target3, 2.0, max_tile_rows=16))
    ref3 = _balanced_loss_ref(logits3, target3, 2.0)
    assert jnp.allclose(out3, ref3, rtol=1e-5, atol=1e-5), (out3, ref3)

    # Narrow (bool) target path: 4x fewer target HBM bytes, same result.
    out4 = jax.block_until_ready(balanced_loss(logits, target.astype(jnp.bool_), 1.0))
    assert jnp.allclose(out4, ref, rtol=1e-5, atol=1e-5), (out4, ref)

    print("KERNEL_OK")
</pallas_src>

<mosaic_0001>
module attributes {stable_mosaic.version = 11 : i64} {
  func.func @_balanced_loss_kernel(%arg0: i32, %arg1: memref<16x128xf32, #tpu.memory_space<vmem>>, %arg2: memref<16x128xf32, #tpu.memory_space<vmem>>, %arg3: memref<1x1xf32, #tpu.memory_space<smem>>, %arg4: memref<8x128xf32, #tpu.memory_space<vmem>>, %arg5: memref<8x128xf32, #tpu.memory_space<vmem>>, %arg6: memref<8x128xf32, #tpu.memory_space<vmem>>, %arg7: memref<8x128xf32, #tpu.memory_space<vmem>>) attributes {dimension_semantics = [#tpu.dimension_semantics<arbitrary>], iteration_bounds = array<i64: 1>, scalar_prefetch = 0 : i64, scratch_operands = 4 : i64, tpu.core_type = #tpu.core_type<tc>, window_params = [{transform_indices = @transform_0, window_bounds = array<i64: 16, 128>}, {transform_indices = @transform_1, window_bounds = array<i64: 16, 128>}, {transform_indices = @transform_2, window_bounds = array<i64: 1, 1>}]} {
    %c0_i32 = arith.constant 0 : i32
    %0 = arith.cmpi eq, %arg0, %c0_i32 : i32
    %1 = arith.extui %0 : i1 to i32
    %c0_i32_0 = arith.constant 0 : i32
    %2 = arith.cmpi ne, %1, %c0_i32_0 : i32
    scf.if %2 {
      %cst_31 = arith.constant 0.000000e+00 : f32
      %49 = vector.broadcast %cst_31 : f32 to vector<8x128xf32>
      %c0_32 = arith.constant 0 : index
      %c0_33 = arith.constant 0 : index
      %50 = vector.load %arg4[%c0_32, %c0_33] : memref<8x128xf32, #tpu.memory_space<vmem>>, vector<8x128xf32>
      tpu.vector_store %arg4[%c0_32, %c0_33], %49 {strides = array<i32>} : memref<8x128xf32, #tpu.memory_space<vmem>>, vector<8x128xf32>,
      %cst_34 = arith.constant 0.000000e+00 : f32
      %51 = vector.broadcast %cst_34 : f32 to vector<8x128xf32>
      %c0_35 = arith.constant 0 : index
      %c0_36 = arith.constant 0 : index
      %52 = vector.load %arg5[%c0_35, %c0_36] : memref<8x128xf32, #tpu.memory_space<vmem>>, vector<8x128xf32>
      tpu.vector_store %arg5[%c0_35, %c0_36], %51 {strides = array<i32>} : memref<8x128xf32, #tpu.memory_space<vmem>>, vector<8x128xf32>,
      %cst_37 = arith.constant 0.000000e+00 : f32
      %53 = vector.broadcast %cst_37 : f32 to vector<8x128xf32>
      %c0_38 = arith.constant 0 : index
      %c0_39 = arith.constant 0 : index
      %54 = vector.load %arg6[%c0_38, %c0_39] : memref<8x128xf32, #tpu.memory_space<vmem>>, vector<8x128xf32>
      tpu.vector_store %arg6[%c0_38, %c0_39], %53 {strides = array<i32>} : memref<8x128xf32, #tpu.memory_space<vmem>>, vector<8x128xf32>,
      %cst_40 = arith.constant 0.000000e+00 : f32
      %55 = vector.broadcast %cst_40 : f32 to vector<8x128xf32>
      %c0_41 = arith.constant 0 : index
      %c0_42 = arith.constant 0 : index
      %56 = vector.load %arg7[%c0_41, %c0_42] : memref<8x128xf32, #tpu.memory_space<vmem>>, vector<8x128xf32>
      tpu.vector_store %arg7[%c0_41, %c0_42], %55 {strides = array<i32>} : memref<8x128xf32, #tpu.memory_space<vmem>>, vector<8x128xf32>,
    } else {
    }
    %c0 = arith.constant 0 : index
    %c0_1 = arith.constant 0 : index
    %3 = vector.load %arg1[%c0, %c0_1] : memref<16x128xf32, #tpu.memory_space<vmem>>, vector<16x128xf32>
    %c0_2 = arith.constant 0 : index
    %c0_3 = arith.constant 0 : index
    %4 = vector.load %arg2[%c0_2, %c0_3] : memref<16x128xf32, #tpu.memory_space<vmem>>, vector<16x128xf32>
    %cst = arith.constant 1.000000e+00 : f32
    %5 = vector.broadcast %cst : f32 to vector<16x128xf32>
    %6 = arith.cmpf oeq, %4, %5 : vector<16x128xf32>
    %cst_4 = arith.constant 0.000000e+00 : f32
    %7 = vector.broadcast %cst_4 : f32 to vector<16x128xf32>
    %8 = arith.cmpf oeq, %4, %7 : vector<16x128xf32>
    %cst_5 = arith.constant 0.000000e+00 : f32
    %9 = vector.broadcast %cst_5 : f32 to vector<16x128xf32>
    %10 = arith.maximumf %3, %9 : vector<16x128xf32>
    %11 = math.absf %3 : vector<16x128xf32>
    %cst_6 = arith.constant 0.000000e+00 : f32
    %12 = vector.broadcast %cst_6 : f32 to vector<16x128xf32>
    %13 = arith.subf %12, %11 : vector<16x128xf32>
    %14 = math.exp %13 : vector<16x128xf32>
    %15 = math.log1p %14 : vector<16x128xf32>
    %16 = arith.addf %10, %15 : vector<16x128xf32>
    %17 = arith.extui %6 : vector<16x128xi1> to vector<16x128xi32>
    %18 = arith.sitofp %17 : vector<16x128xi32> to vector<16x128xf32>
    %19 = arith.extui %8 : vector<16x128xi1> to vector<16x128xi32>
    %20 = arith.sitofp %19 : vector<16x128xi32> to vector<16x128xf32>
    %c0_7 = arith.constant 0 : index
    %c0_8 = arith.constant 0 : index
    %21 = vector.load %arg4[%c0_7, %c0_8] : memref<8x128xf32, #tpu.memory_space<vmem>>, vector<8x128xf32>
    %22 = vector.shape_cast %18 : vector<16x128xf32> to vector<2x8x128xf32>
    %cst_9 = arith.constant dense<0.000000e+00> : vector<8x128xf32>
    %23 = vector.multi_reduction <add>, %22, %cst_9 [0] : vector<2x8x128xf32> to vector<8x128xf32>
    %24 = arith.addf %21, %23 : vector<8x128xf32>
    %c0_10 = arith.constant 0 : index
    %c0_11 = arith.constant 0 : index
    %25 = vector.load %arg4[%c0_10, %c0_11] : memref<8x128xf32, #tpu.memory_space<vmem>>, vector<8x128xf32>
    tpu.vector_store %arg4[%c0_10, %c0_11], %24 {strides = array<i32>} : memref<8x128xf32, #tpu.memory_space<vmem>>, vector<8x128xf32>,
    %c0_12 = arith.constant 0 : index
    %c0_13 = arith.constant 0 : index
    %26 = vector.load %arg5[%c0_12, %c0_13] : memref<8x128xf32, #tpu.memory_space<vmem>>, vector<8x128xf32>
    %27 = vector.shape_cast %20 : vector<16x128xf32> to vector<2x8x128xf32>
    %cst_14 = arith.constant dense<0.000000e+00> : vector<8x128xf32>
    %28 = vector.multi_reduction <add>, %27, %cst_14 [0] : vector<2x8x128xf32> to vector<8x128xf32>
    %29 = arith.addf %26, %28 : vector<8x128xf32>
    %c0_15 = arith.constant 0 : index
    %c0_16 = arith.constant 0 : index
    %30 = vector.load %arg5[%c0_15, %c0_16] : memref<8x128xf32, #tpu.memory_space<vmem>>, vector<8x128xf32>
    tpu.vector_store %arg5[%c0_15, %c0_16], %29 {strides = array<i32>} : memref<8x128xf32, #tpu.memory_space<vmem>>, vector<8x128xf32>,
    %c0_17 = arith.constant 0 : index
    %c0_18 = arith.constant 0 : index
    %31 = vector.load %arg6[%c0_17, %c0_18] : memref<8x128xf32, #tpu.memory_space<vmem>>, vector<8x128xf32>
    %32 = arith.subf %16, %3 : vector<16x128xf32>
    %cst_19 = arith.constant 0.000000e+00 : f32
    %33 = vector.broadcast %cst_19 : f32 to vector<16x128xf32>
    %34 = arith.select %6, %32, %33 : vector<16x128xi1>, vector<16x128xf32>
    %35 = vector.shape_cast %34 : vector<16x128xf32> to vector<2x8x128xf32>
    %cst_20 = arith.constant dense<0.000000e+00> : vector<8x128xf32>
    %36 = vector.multi_reduction <add>, %35, %cst_20 [0] : vector<2x8x128xf32> to vector<8x128xf32>
    %37 = arith.addf %31, %36 : vector<8x128xf32>
    %c0_21 = arith.constant 0 : index
    %c0_22 = arith.constant 0 : index
    %38 = vector.load %arg6[%c0_21, %c0_22] : memref<8x128xf32, #tpu.memory_space<vmem>>, vector<8x128xf32>
    tpu.vector_store %arg6[%c0_21, %c0_22], %37 {strides = array<i32>} : memref<8x128xf32, #tpu.memory_space<vmem>>, vector<8x128xf32>,
    %c0_23 = arith.constant 0 : index
    %c0_24 = arith.constant 0 : index
    %39 = vector.load %arg7[%c0_23, %c0_24] : memref<8x128xf32, #tpu.memory_space<vmem>>, vector<8x128xf32>
    %cst_25 = arith.constant 0.000000e+00 : f32
    %40 = vector.broadcast %cst_25 : f32 to vector<16x128xf32>
    %41 = arith.select %8, %16, %40 : vector<16x128xi1>, vector<16x128xf32>
    %42 = vector.shape_cast %41 : vector<16x128xf32> to vector<2x8x128xf32>
    %cst_26 = arith.constant dense<0.000000e+00> : vector<8x128xf32>
    %43 = vector.multi_reduction <add>, %42, %cst_26 [0] : vector<2x8x128xf32> to vector<8x128xf32>
    %44 = arith.addf %39, %43 : vector<8x128xf32>
    %c0_27 = arith.constant 0 : index
    %c0_28 = arith.constant 0 : index
    %45 = vector.load %arg7[%c0_27, %c0_28] : memref<8x128xf32, #tpu.memory_space<vmem>>, vector<8x128xf32>
    tpu.vector_store %arg7[%c0_27, %c0_28], %44 {strides = array<i32>} : memref<8x128xf32, #tpu.memory_space<vmem>>, vector<8x128xf32>,
    %c0_i32_29 = arith.constant 0 : i32
    %46 = arith.cmpi eq, %arg0, %c0_i32_29 : i32
    %47 = arith.extui %46 : i1 to i32
    %c0_i32_30 = arith.constant 0 : i32
    %48 = arith.cmpi ne, %47, %c0_i32_30 : i32
    scf.if %48 {
      %c0_31 = arith.constant 0 : index
      %c0_32 = arith.constant 0 : index
      %49 = vector.load %arg4[%c0_31, %c0_32] : memref<8x128xf32, #tpu.memory_space<vmem>>, vector<8x128xf32>
      %50 = vector.shape_cast %49 : vector<8x128xf32> to vector<1x8x128xf32>
      %cst_33 = arith.constant dense<0.000000e+00> : vector<1xf32>
      %51 = vector.multi_reduction <add>, %50, %cst_33 [1, 2] : vector<1x8x128xf32> to vector<1xf32>
      %52 = vector.shape_cast %51 : vector<1xf32> to vector<1x1x1xf32>
      %53 = vector.extract %52[0, 0, 0] : f32 from vector<1x1x1xf32>
      %c0_34 = arith.constant 0 : index
      %c0_35 = arith.constant 0 : index
      %54 = vector.load %arg5[%c0_34, %c0_35] : memref<8x128xf32, #tpu.memory_space<vmem>>, vector<8x128xf32>
      %55 = vector.shape_cast %54 : vector<8x128xf32> to vector<1x8x128xf32>
      %cst_36 = arith.constant dense<0.000000e+00> : vector<1xf32>
      %56 = vector.multi_reduction <add>, %55, %cst_36 [1, 2] : vector<1x8x128xf32> to vector<1xf32>
      %57 = vector.shape_cast %56 : vector<1xf32> to vector<1x1x1xf32>
      %58 = vector.extract %57[0, 0, 0] : f32 from vector<1x1x1xf32>
      %c0_37 = arith.constant 0 : index
      %c0_38 = arith.constant 0 : index
      %59 = vector.load %arg6[%c0_37, %c0_38] : memref<8x128xf32, #tpu.memory_space<vmem>>, vector<8x128xf32>
      %60 = vector.shape_cast %59 : vector<8x128xf32> to vector<1x8x128xf32>
      %cst_39 = arith.constant dense<0.000000e+00> : vector<1xf32>
      %61 = vector.multi_reduction <add>, %60, %cst_39 [1, 2] : vector<1x8x128xf32> to vector<1xf32>
      %62 = vector.shape_cast %61 : vector<1xf32> to vector<1x1x1xf32>
      %63 = vector.extract %62[0, 0, 0] : f32 from vector<1x1x1xf32>
      %c0_40 = arith.constant 0 : index
      %c0_41 = arith.constant 0 : index
      %64 = vector.load %arg7[%c0_40, %c0_41] : memref<8x128xf32, #tpu.memory_space<vmem>>, vector<8x128xf32>
      %65 = vector.shape_cast %64 : vector<8x128xf32> to vector<1x8x128xf32>
      %cst_42 = arith.constant dense<0.000000e+00> : vector<1xf32>
      %66 = vector.multi_reduction <add>, %65, %cst_42 [1, 2] : vector<1x8x128xf32> to vector<1xf32>
      %67 = vector.shape_cast %66 : vector<1xf32> to vector<1x1x1xf32>
      %68 = vector.extract %67[0, 0, 0] : f32 from vector<1x1x1xf32>
      %cst_43 = arith.constant 0.000000e+00 : f32
      %69 = arith.cmpf ogt, %53, %cst_43 : f32
      %70 = arith.extui %69 : i1 to i32
      %71 = arith.sitofp %70 : i32 to f32
      %cst_44 = arith.constant 0.000000e+00 : f32
      %72 = arith.cmpf ogt, %58, %cst_44 : f32
      %73 = arith.extui %72 : i1 to i32
      %74 = arith.sitofp %73 : i32 to f32
      %cst_45 = arith.constant 1.000000e+00 : f32
      %75 = arith.mulf %cst_45, %74 : f32
      %76 = arith.addf %71, %75 : f32
      %cst_46 = arith.constant 0.000000e+00 : f32
      %77 = arith.cmpf ogt, %53, %cst_46 : f32
      %78 = arith.divf %63, %53 : f32
      %cst_47 = arith.constant 0.000000e+00 : f32
      %79 = arith.select %77, %78, %cst_47 : f32
      %cst_48 = arith.constant 0.000000e+00 : f32
      %80 = arith.cmpf ogt, %58, %cst_48 : f32
      %cst_49 = arith.constant 1.000000e+00 : f32
      %81 = arith.mulf %cst_49, %68 : f32
      %82 = arith.divf %81, %58 : f32
      %cst_50 = arith.constant 0.000000e+00 : f32
      %83 = arith.select %80, %82, %cst_50 : f32
      %84 = arith.addf %79, %83 : f32
      %85 = arith.divf %84, %76 : f32
      %c0_51 = arith.constant 0 : index
      %c0_52 = arith.constant 0 : index
      %86 = memref.load %arg3[%c0_51, %c0_52] : memref<1x1xf32, #tpu.memory_space<smem>>
      memref.store %85, %arg3[%c0_51, %c0_52] : memref<1x1xf32, #tpu.memory_space<smem>>
    } else {
    }
    return
  }
  func.func @transform_0(%arg0: i32) -> (i32, i32) {
    %c0_i32 = arith.constant 0 : i32
    %c0_i32_0 = arith.constant 0 : i32
    return %arg0, %c0_i32 : i32, i32
  }
  func.func @transform_1(%arg0: i32) -> (i32, i32) {
    %c0_i32 = arith.constant 0 : i32
    %c0_i32_0 = arith.constant 0 : i32
    return %arg0, %c0_i32 : i32, i32
  }
  func.func @transform_2(%arg0: i32) -> (i32, i32) {
    %c0_i32 = arith.constant 0 : i32
    %c0_i32_0 = arith.constant 0 : i32
    %c0_i32_1 = arith.constant 0 : i32
    return %c0_i32, %c0_i32_0 : i32, i32
  }
}

</mosaic_0001>

<bundles_post_ra>
// kernel: tpu_custom_call.1
= control target key start
LH: loop header
LB: loop body
LE: loop exit
PB: predicated region body
PF: predicated region fallthrough
CT: control target
= control target key end

     0   :  { %7 = vsyncpa [#allocation7], 0  ;;  %s365_s0 = inlined_call_operand.hbm [shape: f32[16,128], index: 0, kind: input, shape index: {}]   ;;  %s366_s1 = inlined_call_operand.hbm [shape: f32[16,128], index: 1, kind: input, shape index: {}]   ;;  %s367_s2 = inlined_call_operand.hbm [shape: f32[1,1], index: 2, kind: output, shape index: {}]  }
   0x1   :  { %8 = vsyncpa [#allocation10], 0 }
   0x2   :  { %9 = vsyncpa [#allocation8], 0  ;;  %s296_s9 = smov [#allocation6]   ;;  %s236_s13 = scalar_lea.hbm %s365_s0, 256 }
   0x3   :  { %s15_s10 = sshll.u32 %s296_s9, 4  ;;  %p237_p0 = scmp.ne.s32.totalorder %s365_s0, %s236_s13  ;;  %s16_s10 = int_to_ptr.vmem [resolvable:$true] %s15_s10 }
   0x4   :  { %p240_p1 = scmp.lt.u32.totalorder %s236_s13, %s365_s0 }
   0x6   :  { %p242_p2 = pnand %p240_p1, %p237_p0 }
   0x8   :  { %245 = shalt.err (!%p242_p2)
}
   0x9   :  { %s246_s18 = scalar_lea.vmem %s16_s10, 256  ;;  %p251_p4 = scmp.lt.s32.totalorder %s16_s10, %s16_s10 }
   0xa   :  { %p247_p3 = scmp.ne.s32.totalorder %s16_s10, %s246_s18  ;;  %p252_p5 = scmp.lt.s32.totalorder %s246_s18, %s246_s18 }
   0xc   :  { %p253_p6 = por %p252_p5, %p251_p4 }
   0xe   :  { %p254_p7 = pnand %p253_p6, %p247_p3 }
  0x10   :  { %257 = shalt.err (!%p254_p7)
}
  0x11   :  { %s297_s19 = smov 128   ;;  %s298_s20 = smov 8  }
  0x12   :  { %21 = dma.hbm_to_vmem [thread:$0]  %s365_s0, 256, %s16_s10, [#allocation7], %s297_s19, %s297_s19, %s298_s20  }
  0x13   :  { %s299_s23 = smov [#allocation9]   ;;  %s258_s27 = scalar_lea.hbm %s366_s1, 256 }
  0x14   :  { %s27_s24 = sshll.u32 %s299_s23, 4  ;;  %p259_p8 = scmp.ne.s32.totalorder %s366_s1, %s258_s27  ;;  %s28_s24 = int_to_ptr.vmem [resolvable:$true] %s27_s24 }
  0x15   :  { %p262_p9 = scmp.lt.u32.totalorder %s258_s27, %s366_s1 }
  0x17   :  { %p264_p10 = pnand %p262_p9, %p259_p8 }
  0x19   :  { %267 = shalt.err (!%p264_p10)
}
  0x1a   :  { %s268_s4 = scalar_lea.vmem %s28_s24, 256  ;;  %p273_p12 = scmp.lt.s32.totalorder %s28_s24, %s28_s24 }
  0x1b   :  { %p269_p11 = scmp.ne.s32.totalorder %s28_s24, %s268_s4  ;;  %p274_p13 = scmp.lt.s32.totalorder %s268_s4, %s268_s4 }
  0x1d   :  { %p275_p0 = por %p274_p13, %p273_p12 }
  0x1f   :  { %p276_p1 = pnand %p275_p0, %p269_p11 }
  0x21   :  { %279 = shalt.err (!%p276_p1)
}
  0x22   :  { %33 = dma.hbm_to_vmem [thread:$0]  %s366_s1, 256, %s28_s24, [#allocation10], %s297_s19, %s297_s19, %s298_s20  }
  0x23   :  { %290 = dma.done.wait [#allocation7], 256  }
  0x24   :  { %291 = vsyncadd [#allocation7], 4294967040 }
  0x25   :  { %292 = dma.done.wait [#allocation10], 256  }
  0x26   :  { %293 = vsyncadd [#allocation10], 4294967040  ;;  %v50_v0 = vld [vmem:[#allocation9] sm:$0xff]  ;;  %v51_v1 = vld [vmem:[#allocation9 + $0x8] sm:$0xff]  ;;  %v300_v4 = vmov 0.0   ;;  %s280_s23 = scalar_lea.hbm %s367_s2, 16 }
  0x27   :  { %vm52_vm0 = vcmp.eq.f32.partialorder %v50_v0, 1.0  ;;  %vm53_vm1 = vcmp.eq.f32.partialorder %v51_v1, 1.0  ;;  %vm54_vm2 = vcmp.eq.f32.partialorder %v50_v0, 0.0  ;;  %vm55_vm3 = vcmp.eq.f32.partialorder %v51_v1, 0.0  ;;  %v48_v2 = vld [vmem:[#allocation6] sm:$0xff]  ;;  %v49_v3 = vld [vmem:[#allocation6 + $0x8] sm:$0xff]  ;;  %p281_p4 = scmp.ne.s32.totalorder %s367_s2, %s280_s23  ;;  %p284_p5 = scmp.lt.u32.totalorder %s280_s23, %s367_s2 }
  0x28   :  { %v198_v5 = vsel %vm52_vm0, 1.0, %v300_v4  ;;  %v199_v6 = vsel %vm53_vm1, 1.0, %v300_v4  ;;  %v200_v7 = vsel %vm54_vm2, 1.0, %v300_v4  ;;  %v201_v8 = vsel %vm55_vm3, 1.0, %v300_v4 }
  0x29   :  { %v95_v9 = vadd.f32 %v199_v6, %v198_v5  ;;  %v58_v10 = vand.u32 2147483647, %v48_v2  ;;  %v59_v11 = vand.u32 2147483647, %v49_v3  ;;  %v99_v12 = vadd.f32 %v201_v8, %v200_v7  ;;  %p286_p6 = pnand %p284_p5, %p281_p4 }
  0x2a   :  { %v56_v29 = vmax.f32 %v48_v2, 0.0  ;;  %v57_v32 = vmax.f32 %v49_v3, 0.0 }
  0x2b   :  { %120 = vadd.xlane.f32.xlu0 %v95_v9  ;;  %v60_v13 = vsub.f32 0.0, %v58_v10  ;;  %v61_v14 = vsub.f32 0.0, %v59_v11 }
  0x2d   :  { %v62_v15 = vmul.f32 1.442695, %v60_v13  ;;  %v64_v16 = vmul.f32 1.442695, %v61_v14 }
  0x2f   :  { %130 = vadd.xlane.f32.xlu0 %v99_v12  ;;  %222 = vpow2.f32 %v62_v15 }
  0x30   :  { %224 = vpow2.f32 %v64_v16 }
  0x39   :  { %v223_v17 = vpop.eup %222 }
  0x3a   :  { %v225_v18 = vpop.eup %224  ;;  %v66_v19 = vadd.f32 1.0, %v223_v17  ;;  %v69_v21 = vmul.f32 -0.5, %v223_v17  ;;  %v72_v24 = vand.u32 2147483647, %v223_v17 }
  0x3b   :  { %v75_v20 = vadd.f32 1.0, %v225_v18  ;;  %v78_v22 = vmul.f32 -0.5, %v225_v18  ;;  %v81_v26 = vand.u32 2147483647, %v225_v18 }
  0x3c   :  { %226 = vlog2.f32 %v66_v19  ;;  %v70_v23 = vadd.f32 1.0, %v69_v21  ;;  %vm73_vm4 = vcmp.lt.f32.partialorder %v72_v24, 0.0004427343 }
  0x3d   :  { %228 = vlog2.f32 %v75_v20  ;;  %v79_v25 = vadd.f32 1.0, %v78_v22  ;;  %vm82_vm5 = vcmp.lt.f32.partialorder %v81_v26, 0.0004427343 }
  0x3e   :  { %v71_v27 = vmul.f32 %v223_v17, %v70_v23 }
  0x3f   :  { %v80_v30 = vmul.f32 %v225_v18, %v79_v25 }
  0x46   :  { %v227_v28 = vpop.eup %226 }
  0x47   :  { %v229_v31 = vpop.eup %228  ;;  %v68_v33 = vmul.f32 0.6931472, %v227_v28 }
  0x48   :  { %v77_v34 = vmul.f32 0.6931472, %v229_v31 }
  0x49   :  { %v74_v35 = vsel %vm73_vm4, %v71_v27, %v68_v33 }
  0x4a   :  { %v83_v36 = vsel %vm82_vm5, %v80_v30, %v77_v34  ;;  %v84_v37 = vadd.f32 %v74_v35, %v56_v29 }
  0x4b   :  { %v85_v38 = vadd.f32 %v83_v36, %v57_v32 }
  0x4c   :  { %v103_v39 = vsub.f32 %v84_v37, %v48_v2  ;;  %v111_v43 = vsel %vm54_vm2, %v84_v37, 0.0 }
  0x4d   :  { %v104_v40 = vsub.f32 %v85_v38, %v49_v3  ;;  %v112_v44 = vsel %vm55_vm3, %v85_v38, 0.0 }
  0x4e   :  { %v105_v41 = vsel %vm52_vm0, %v103_v39, 0.0  ;;  %v113_v46 = vadd.f32 %v112_v44, %v111_v43 }
  0x4f   :  { %v106_v42 = vsel %vm53_vm1, %v104_v40, 0.0 }
  0x50   :  { %v107_v45 = vadd.f32 %v106_v42, %v105_v41 }
  0x52   :  { %140 = vadd.xlane.f32.xlu1 %v107_v45 }
  0x56   :  { %150 = vadd.xlane.f32.xlu1 %v113_v46 }
  0xb8   :  { %v121_v47 = vpop.xlane.xlu0 %120 }
  0xb9   :  { %v122_v48 = vrot.slane %v121_v47, 4 }
  0xbb   :  { %v123_v49 = vadd.f32 %v122_v48, %v121_v47 }
  0xbc   :  { %v131_v50 = vpop.xlane.xlu0 %130 }
  0xbd   :  { %v124_v51 = vrot.slane %v123_v49, 2  ;;  %v132_v52 = vrot.slane %v131_v50, 4 }
  0xbf   :  { %v133_v53 = vadd.f32 %v132_v52, %v131_v50  ;;  %v125_v54 = vadd.f32 %v124_v51, %v123_v49 }
  0xc1   :  { %v134_v55 = vrot.slane %v133_v53, 2  ;;  %v126_v56 = vrot.slane %v125_v54, 1 }
  0xc3   :  { %v135_v57 = vadd.f32 %v134_v55, %v133_v53  ;;  %v127_v58 = vadd.f32 %v126_v56, %v125_v54 }
  0xc5   :  { %202 = vpush %v127_v58  ;;  %v136_v59 = vrot.slane %v135_v57, 1 }
  0xc7   :  { %v137_v60 = vadd.f32 %v136_v59, %v135_v57 }
  0xc9   :  { %204 = vpush %v137_v60 }
  0xdf   :  { %v141_v61 = vpop.xlane.xlu1 %140 }
  0xe0   :  { %v142_v62 = vrot.slane %v141_v61, 4 }
  0xe2   :  { %v143_v63 = vadd.f32 %v142_v62, %v141_v61 }
  0xe3   :  { %v151_v0 = vpop.xlane.xlu1 %150 }
  0xe4   :  { %v144_v1 = vrot.slane %v143_v63, 2  ;;  %v152_v2 = vrot.slane %v151_v0, 4 }
  0xe6   :  { %v153_v3 = vadd.f32 %v152_v2, %v151_v0  ;;  %v145_v4 = vadd.f32 %v144_v1, %v143_v63 }
  0xe8   :  { %v154_v5 = vrot.slane %v153_v3, 2  ;;  %v146_v6 = vrot.slane %v145_v4, 1 }
  0xea   :  { %v155_v7 = vadd.f32 %v154_v5, %v153_v3  ;;  %v147_v8 = vadd.f32 %v146_v6, %v145_v4 }
  0xec   :  { %206 = vpush %v147_v8  ;;  %v156_v9 = vrot.slane %v155_v7, 1 }
  0xee   :  { %v157_v10 = vadd.f32 %v156_v9, %v155_v7 }
  0xf0   :  { %208 = vpush %v157_v10 }
  0xf6   :  { %s203_s1 = spop %202 }
  0xf7   :  { %p159_p2 = scmp.gt.f32.partialorder %s203_s1, 0.0  ;;  %v166_v11 = vstv %s203_s1 }
  0xf8   :  { %230 = vrcp.f32 %v166_v11 }
  0xf9   :  { %s160_s6 = scalar_select %p159_p2, 1, 0 }
  0xfa   :  { %s205_s7 = spop %204 }
  0xfb   :  { %p162_p3 = scmp.gt.f32.partialorder %s205_s7, 0.0  ;;  %v171_v12 = vstv %s205_s7  ;;  %s161_s9 = scvt.s32.f32 %s160_s6 }
  0xfc   :  { %232 = vrcp.f32 %v171_v12 }
  0xfd   :  { %s163_s8 = scalar_select %p162_p3, 1, 0 }
  0xff   :  { %s164_s10 = scvt.s32.f32 %s163_s8 }
 0x101   :  { %s165_s11 = sadd.f32 %s164_s10, %s161_s9 }
 0x102   :  { %v231_v13 = vpop.eup %230 }
 0x103   :  { %v177_v14 = vstv %s165_s11  ;;  %210 = vpush %v231_v13 }
 0x104   :  { %234 = vrcp.f32 %v177_v14 }
 0x106   :  { %v233_v15 = vpop.eup %232 }
 0x107   :  { %212 = vpush %v233_v15 }
 0x10e   :  { %v235_v16 = vpop.eup %234 }
 0x10f   :  { %214 = vpush %v235_v16 }
 0x11d   :  { %s207_s12 = spop %206 }
 0x121   :  { %s209_s13 = spop %208 }
 0x134   :  { %s211_s14 = spop %210 }
 0x135   :  { %s169_s15 = smul.f32 %s211_s14, %s207_s12 }
 0x137   :  { %s369_s15 = smov (!%p159_p2, %s169_s15), 0.0 }
 0x138   :  { %s213_s16 = spop %212 }
 0x139   :  { %s174_s17 = smul.f32 %s213_s16, %s209_s13 }
 0x13b   :  { %s371_s17 = smov (!%p162_p3, %s174_s17), 0.0 }
 0x13c   :  { %s176_s18 = sadd.f32 %s371_s17, %s369_s15 }
 0x140   :  { %s215_s19 = spop %214 }
 0x141   :  { %s180_s20 = smul.f32 %s215_s19, %s176_s18 }
 0x143   :  { %182 = sst [smem:[#allocation11]] %s180_s20 }
 0x144   :  { %289 = shalt.err (!%p286_p6)
}
 0x145   :  { %s301_s28 = smov [#allocation11]  }
 0x146   :  { %190 = dma.smem_to_hbm %s301_s28, 16, %s367_s2, [#allocation8]  }
 0x147   :  { %294 = dma.done.wait [#allocation8], 16  }
 0x148   :  { %295 = vsyncadd [#allocation8], 4294967280 }
 0x149   :  { %194 = sfence }
 0x14a   :  { %195 = vsyncpa [#allocation7], 1 }
 0x14b   :  { %196 = vsyncpa [#allocation10], 1 }
 0x14c   :  { %197 = vsyncpa [#allocation8], 1 }

</bundles_post_ra>
